<compile_context>
chip_gen: v5e
topology: v5e:2x2
jax: 0.10.0
libtpu: 0.0.40
codegen_flags: <defaults>
</compile_context>

<pallas_src>
import jax
import jax.numpy as jnp
import numpy as np
from jax.experimental import pallas as pl
from jax.experimental.pallas import tpu as pltpu

EPS = 1e-5  # PyTorch BatchNorm1d default eps


def _round_up(x, m):
    return ((x + m - 1) // m) * m


def _make_kernel(BB, LP, P, PPAD, K, D, COUTP, has_downsample):
    f32 = jnp.float32

    def kernel(xc_ref, w1_ref, s1_ref, t1_ref, w2_ref, s2_ref, t2_ref,
               xr_ref, wd_ref, bd_ref, out_ref, hpad_ref):
        # ---- stage 1: weight-normed dilated causal conv1 (already chomped) ----
        # im2col was done host-side, so this is ONE MXU matmul over all BB*LP rows
        # of this batch block (batch folded into the matmul M dimension).
        acc = jnp.dot(xc_ref[...], w1_ref[...], preferred_element_type=f32)  # [BB*LP, COUTP]
        # BatchNorm1d (eval) with the conv1 bias folded into the shift, then ReLU.
        # TODO(synk): nn.Dropout is identity here (inference); training-mode dropout
        # masks and BatchNorm batch statistics are not implemented.
        h = jnp.maximum(acc * s1_ref[...] + t1_ref[...], 0.0)

        # ---- stage 2: per-sequence causal left-pad of h via VMEM scratch ----
        # Pad region rounded up to 8 sublanes (PPAD); it is constant zero, so it is
        # initialised only on the first grid step.
        @pl.when(pl.program_id(0) == 0)
        def _init_pad():
            if PPAD > 0:
                for b in range(BB):
                    hpad_ref[b, 0:PPAD, :] = jnp.zeros((PPAD, COUTP), f32)

        for b in range(BB):  # sublane-aligned writes (LP, PPAD multiples of 8)
            hpad_ref[b, PPAD:PPAD + LP, :] = h[b * LP:(b + 1) * LP, :]

        # ---- conv2 + BN2 + ReLU, residual add, final ReLU (per sequence, so that
        # causality never leaks across batch elements of the block) ----
        for b in range(BB):
            acc2 = jnp.zeros((LP, COUTP), f32)
            for k in range(K):  # K tap matmuls, lane-dense contraction = COUTP
                off = PPAD - P + k * D
                acc2 = acc2 + jnp.dot(hpad_ref[b, off:off + LP, :], w2_ref[k],
                                      preferred_element_type=f32)
            h2 = jnp.maximum(acc2 * s2_ref[...] + t2_ref[...], 0.0)

            if has_downsample:  # 1x1-conv residual
                res = jnp.dot(xr_ref[b * LP:(b + 1) * LP, :], wd_ref[...],
                              preferred_element_type=f32) + bd_ref[...]
            else:               # identity residual (CIN == COUT, channel layout matches)
                res = xr_ref[b * LP:(b + 1) * LP, :]
            out_ref[b * LP:(b + 1) * LP, :] = jnp.maximum(h2 + res, 0.0).astype(out_ref.dtype)

    return kernel


def temporal_block_pallas(x, params, *, kernel_size, dilation, padding):
    """x: [B, C_in, L] (PyTorch Conv1d layout).  Returns [B, C_out, L]."""
    B, CIN, L = x.shape
    K, D, P = kernel_size, dilation, padding
    assert P == D * (K - 1), "TCN convention: padding == dilation * (kernel_size - 1)"

    COUT = params["g1"].shape[0]
    has_downsample = "wd" in params
    if not has_downsample:
        assert CIN == COUT, "identity residual path requires n_inputs == n_outputs"

    f32 = jnp.float32
    LP = _round_up(L, 8)            # time rows padded (at the end) to a sublane multiple
    PPAD = _round_up(P, 8)          # causal-pad region of the scratch, sublane aligned
    COUTP = _round_up(COUT, 128)    # lane-dense output channels (unmasked stores)
    KC = _round_up(K * CIN, 128)    # lane-dense im2col contraction for conv1
    CR = COUTP if not has_downsample else _round_up(CIN, 128)

    # ---- fold weight-norm + conv bias + BatchNorm(eval) host-side ----
    def weight_norm(v, g):          # v: [COUT, Cin, K], g: [COUT]  (PyTorch dim=0)
        n = jnp.sqrt(jnp.sum(v * v, axis=(1, 2), keepdims=True))
        return g[:, None, None] * v / n

    def bn_fold(conv_bias, gamma, beta, mean, var):
        s = gamma / jnp.sqrt(var + EPS)
        t = (conv_bias - mean) * s + beta
        return (jnp.pad(s, (0, COUTP - COUT))[None, :],
                jnp.pad(t, (0, COUTP - COUT))[None, :])        # each [1, COUTP]

    # conv1 as a single im2col matmul weight [KC, COUTP]
    w1 = jnp.transpose(weight_norm(params["v1"], params["g1"]), (2, 1, 0))   # [K, CIN, COUT]
    w1c = jnp.pad(w1.reshape(K * CIN, COUT), ((0, KC - K * CIN), (0, COUTP - COUT)))
    # conv2 as K tap matmuls [K, COUTP, COUTP]
    w2 = jnp.transpose(weight_norm(params["v2"], params["g2"]), (2, 1, 0))   # [K, COUT, COUT]
    w2 = jnp.pad(w2, ((0, 0), (0, COUTP - COUT), (0, COUTP - COUT)))
    s1, t1 = bn_fold(params["b1"], params["bn1_g"], params["bn1_b"],
                     params["bn1_m"], params["bn1_v"])
    s2, t2 = bn_fold(params["b2"], params["bn2_g"], params["bn2_b"],
                     params["bn2_m"], params["bn2_v"])

    if has_downsample:
        wd = jnp.pad(jnp.transpose(params["wd"][:, :, 0], (1, 0)),
                     ((0, CR - CIN), (0, COUTP - COUT)))                     # [CR, COUTP]
        bd = jnp.pad(params["bd"], (0, COUTP - COUT))[None, :]
    else:
        wd = jnp.zeros((CR, COUTP), f32)        # unused
        bd = jnp.zeros((1, COUTP), f32)

    # ---- host-side im2col: stack the K dilated taps into the contraction dim ----
    x_tm = jnp.transpose(x, (0, 2, 1)).astype(f32)               # [B, L, CIN]
    x_pad = jnp.pad(x_tm, ((0, 0), (P, LP - L), (0, 0)))         # causal left pad + align
    x_cols = jnp.concatenate([x_pad[:, k * D:k * D + LP, :] for k in range(K)], axis=-1)
    x_cols = jnp.pad(x_cols, ((0, 0), (0, 0), (0, KC - K * CIN))).reshape(B * LP, KC)
    # residual input (x itself, time-major), channel-padded to the matmul layout
    xr = jnp.pad(x_tm, ((0, 0), (0, LP - L), (0, CR - CIN))).reshape(B * LP, CR)

    # batch-block size: fold batches into the matmul M dimension (>=256 rows if possible)
    BB = min(B, max(1, -(-256 // LP)))
    while B % BB:
        BB -= 1
    M = BB * LP

    kernel = _make_kernel(BB, LP, P, PPAD, K, D, COUTP, has_downsample)
    const2 = lambda i: (0, 0)
    out = pl.pallas_call(
        kernel,
        out_shape=jax.ShapeDtypeStruct((B * LP, COUTP), x.dtype),
        grid=(B // BB,),
        in_specs=[
            pl.BlockSpec((M, KC), lambda i: (i, 0)),            # im2col'd x (per batch block)
            pl.BlockSpec((KC, COUTP), const2),                  # conv1 weight (im2col layout)
            pl.BlockSpec((1, COUTP), const2),                   # bn1 scale
            pl.BlockSpec((1, COUTP), const2),                   # bn1 shift (+conv1 bias)
            pl.BlockSpec((K, COUTP, COUTP), lambda i: (0, 0, 0)),  # conv2 tap weights
            pl.BlockSpec((1, COUTP), const2),                   # bn2 scale
            pl.BlockSpec((1, COUTP), const2),                   # bn2 shift (+conv2 bias)
            pl.BlockSpec((M, CR), lambda i: (i, 0)),            # residual input
            pl.BlockSpec((CR, COUTP), const2),                  # downsample weight
            pl.BlockSpec((1, COUTP), const2),                   # downsample bias
        ],
        out_specs=pl.BlockSpec((M, COUTP), lambda i: (i, 0)),   # lane-dense output block
        scratch_shapes=[pltpu.VMEM((BB, PPAD + LP, COUTP), jnp.float32)],
        compiler_params=pltpu.CompilerParams(
            dimension_semantics=("parallel",)),
    )(x_cols, w1c, s1, t1, w2, s2, t2, xr, wd, bd)

    out = out.reshape(B, LP, COUTP)[:, :L, :COUT]
    return jnp.transpose(out, (0, 2, 1))        # back to PyTorch [B, C_out, L]


def temporal_block_ref(x, params, *, kernel_size, dilation, padding):
    """Pure-JAX reference with PyTorch semantics (eval mode) for verification."""
    def weight_norm(v, g):
        n = jnp.sqrt(jnp.sum(v * v, axis=(1, 2), keepdims=True))
        return g[:, None, None] * v / n

    def conv(x, w, b):
        y = jax.lax.conv_general_dilated(
            x, w, window_strides=(1,), padding=[(padding, padding)],
            rhs_dilation=(dilation,), dimension_numbers=("NCH", "OIH", "NCH"))
        return y + b[None, :, None]

    def bn(y, gamma, beta, mean, var):
        return ((y - mean[None, :, None]) / jnp.sqrt(var[None, :, None] + EPS)
                * gamma[None, :, None] + beta[None, :, None])

    h = conv(x, weight_norm(params["v1"], params["g1"]), params["b1"])[:, :, :-padding]
    h = jax.nn.relu(bn(h, params["bn1_g"], params["bn1_b"],
                       params["bn1_m"], params["bn1_v"]))
    h2 = conv(h, weight_norm(params["v2"], params["g2"]), params["b2"])[:, :, :-padding]
    h2 = jax.nn.relu(bn(h2, params["bn2_g"], params["bn2_b"],
                        params["bn2_m"], params["bn2_v"]))
    if "wd" in params:
        res = jax.lax.conv_general_dilated(
            x, params["wd"], window_strides=(1,), padding=[(0, 0)],
            dimension_numbers=("NCH", "OIH", "NCH")) + params["bd"][None, :, None]
    else:
        res = x
    return jax.nn.relu(h2 + res)


if __name__ == "__main__":
    B, CIN, COUT, L = 2, 4, 32, 16
    K, D = 3, 2
    P = D * (K - 1)                      # causal padding, chomped back off

    key = jax.random.PRNGKey(0)
    ks = jax.random.split(key, 17)
    params = {
        "v1": 0.01 * jax.random.normal(ks[0], (COUT, CIN, K), jnp.float32),
        "g1": jax.random.uniform(ks[1], (COUT,), jnp.float32, 0.5, 1.5),
        "b1": 0.1 * jax.random.normal(ks[2], (COUT,), jnp.float32),
        "bn1_g": jax.random.uniform(ks[3], (COUT,), jnp.float32, 0.5, 1.5),
        "bn1_b": 0.1 * jax.random.normal(ks[4], (COUT,), jnp.float32),
        "bn1_m": 0.1 * jax.random.normal(ks[5], (COUT,), jnp.float32),
        "bn1_v": jax.random.uniform(ks[6], (COUT,), jnp.float32, 0.5, 1.5),
        "v2": 0.01 * jax.random.normal(ks[7], (COUT, COUT, K), jnp.float32),
        "g2": jax.random.uniform(ks[8], (COUT,), jnp.float32, 0.5, 1.5),
        "b2": 0.1 * jax.random.normal(ks[9], (COUT,), jnp.float32),
        "bn2_g": jax.random.uniform(ks[10], (COUT,), jnp.float32, 0.5, 1.5),
        "bn2_b": 0.1 * jax.random.normal(ks[11], (COUT,), jnp.float32),
        "bn2_m": 0.1 * jax.random.normal(ks[12], (COUT,), jnp.float32),
        "bn2_v": jax.random.uniform(ks[13], (COUT,), jnp.float32, 0.5, 1.5),
        "wd": 0.01 * jax.random.normal(ks[14], (COUT, CIN, 1), jnp.float32),
        "bd": 0.1 * jax.random.normal(ks[15], (COUT,), jnp.float32),
    }
    x = jax.random.normal(ks[16], (B, CIN, L), jnp.float32)

    out = temporal_block_pallas(x, params, kernel_size=K, dilation=D, padding=P)
    out = jax.block_until_ready(out)
    assert out.shape == (B, COUT, L), out.shape

    ref = temporal_block_ref(x, params, kernel_size=K, dilation=D, padding=P)
    np.testing.assert_allclose(np.asarray(out), np.asarray(ref),
                               atol=1e-5, rtol=1e-3)
    print("KERNEL_OK")
</pallas_src>

<mosaic_0001>
module attributes {stable_mosaic.version = 11 : i64} {
  func.func @kernel(%arg0: i32, %arg1: memref<32x128xf32, #tpu.memory_space<vmem>>, %arg2: memref<128x128xf32, #tpu.memory_space<vmem>>, %arg3: memref<1x128xf32, #tpu.memory_space<vmem>>, %arg4: memref<1x128xf32, #tpu.memory_space<vmem>>, %arg5: memref<3x128x128xf32, #tpu.memory_space<vmem>>, %arg6: memref<1x128xf32, #tpu.memory_space<vmem>>, %arg7: memref<1x128xf32, #tpu.memory_space<vmem>>, %arg8: memref<32x128xf32, #tpu.memory_space<vmem>>, %arg9: memref<128x128xf32, #tpu.memory_space<vmem>>, %arg10: memref<1x128xf32, #tpu.memory_space<vmem>>, %arg11: memref<32x128xf32, #tpu.memory_space<vmem>>, %arg12: memref<2x24x128xf32, #tpu.memory_space<vmem>>) attributes {dimension_semantics = [#tpu.dimension_semantics<parallel>], iteration_bounds = array<i64: 1>, scalar_prefetch = 0 : i64, scratch_operands = 1 : i64, tpu.core_type = #tpu.core_type<tc>, window_params = [{transform_indices = @transform_0, window_bounds = array<i64: 32, 128>}, {pipeline_mode = #tpu.pipeline_mode<synchronous>, transform_indices = @transform_1, window_bounds = array<i64: 128, 128>}, {pipeline_mode = #tpu.pipeline_mode<synchronous>, transform_indices = @transform_2, window_bounds = array<i64: 1, 128>}, {pipeline_mode = #tpu.pipeline_mode<synchronous>, transform_indices = @transform_3, window_bounds = array<i64: 1, 128>}, {pipeline_mode = #tpu.pipeline_mode<synchronous>, transform_indices = @transform_4, window_bounds = array<i64: 3, 128, 128>}, {pipeline_mode = #tpu.pipeline_mode<synchronous>, transform_indices = @transform_5, window_bounds = array<i64: 1, 128>}, {pipeline_mode = #tpu.pipeline_mode<synchronous>, transform_indices = @transform_6, window_bounds = array<i64: 1, 128>}, {transform_indices = @transform_7, window_bounds = array<i64: 32, 128>}, {pipeline_mode = #tpu.pipeline_mode<synchronous>, transform_indices = @transform_8, window_bounds = array<i64: 128, 128>}, {pipeline_mode = #tpu.pipeline_mode<synchronous>, transform_indices = @transform_9, window_bounds = array<i64: 1, 128>}, {transform_indices = @transform_10, window_bounds = array<i64: 32, 128>}]} {
    %c0 = arith.constant 0 : index
    %c0_0 = arith.constant 0 : index
    %0 = vector.load %arg1[%c0, %c0_0] : memref<32x128xf32, #tpu.memory_space<vmem>>, vector<32x128xf32>
    %c0_1 = arith.constant 0 : index
    %c0_2 = arith.constant 0 : index
    %1 = vector.load %arg2[%c0_1, %c0_2] : memref<128x128xf32, #tpu.memory_space<vmem>>, vector<128x128xf32>
    %cst = arith.constant dense<0.000000e+00> : vector<32x128xf32>
    %2 = tpu.matmul %0, %1, %cst {dimension_numbers = #tpu.dot_dimension_numbers<[1], [0], [0], [1], [0, 0, 1, 1], [], []>} : vector<32x128xf32>, vector<128x128xf32>, vector<32x128xf32> -> vector<32x128xf32>
    %c0_3 = arith.constant 0 : index
    %c0_4 = arith.constant 0 : index
    %3 = vector.load %arg3[%c0_3, %c0_4] : memref<1x128xf32, #tpu.memory_space<vmem>>, vector<1x128xf32>
    %4 = vector.broadcast %3 : vector<1x128xf32> to vector<32x128xf32>
    %5 = arith.mulf %2, %4 : vector<32x128xf32>
    %c0_5 = arith.constant 0 : index
    %c0_6 = arith.constant 0 : index
    %6 = vector.load %arg4[%c0_5, %c0_6] : memref<1x128xf32, #tpu.memory_space<vmem>>, vector<1x128xf32>
    %7 = vector.broadcast %6 : vector<1x128xf32> to vector<32x128xf32>
    %8 = arith.addf %5, %7 : vector<32x128xf32>
    %cst_7 = arith.constant 0.000000e+00 : f32
    %9 = vector.broadcast %cst_7 : f32 to vector<32x128xf32>
    %10 = arith.maximumf %8, %9 : vector<32x128xf32>
    %c0_i32 = arith.constant 0 : i32
    %11 = arith.cmpi eq, %arg0, %c0_i32 : i32
    %12 = arith.extui %11 : i1 to i32
    %c0_i32_8 = arith.constant 0 : i32
    %13 = arith.cmpi ne, %12, %c0_i32_8 : i32
    scf.if %13 {
      %cst_83 = arith.constant 0.000000e+00 : f32
      %96 = vector.broadcast %cst_83 : f32 to vector<8x128xf32>
      %c0_84 = arith.constant 0 : index
      %c0_85 = arith.constant 0 : index
      %c0_86 = arith.constant 0 : index
      %97 = vector.load %arg12[%c0_84, %c0_85, %c0_86] : memref<2x24x128xf32, #tpu.memory_space<vmem>>, vector<1x8x128xf32>
      %98 = vector.shape_cast %97 : vector<1x8x128xf32> to vector<8x128xf32>
      %99 = vector.shape_cast %96 : vector<8x128xf32> to vector<1x8x128xf32>
      tpu.vector_store %arg12[%c0_84, %c0_85, %c0_86], %99 {strides = array<i32>} : memref<2x24x128xf32, #tpu.memory_space<vmem>>, vector<1x8x128xf32>,
      %cst_87 = arith.constant 0.000000e+00 : f32
      %100 = vector.broadcast %cst_87 : f32 to vector<8x128xf32>
      %c1_88 = arith.constant 1 : index
      %c0_89 = arith.constant 0 : index
      %c0_90 = arith.constant 0 : index
      %101 = vector.load %arg12[%c1_88, %c0_89, %c0_90] : memref<2x24x128xf32, #tpu.memory_space<vmem>>, vector<1x8x128xf32>
      %102 = vector.shape_cast %101 : vector<1x8x128xf32> to vector<8x128xf32>
      %103 = vector.shape_cast %100 : vector<8x128xf32> to vector<1x8x128xf32>
      tpu.vector_store %arg12[%c1_88, %c0_89, %c0_90], %103 {strides = array<i32>} : memref<2x24x128xf32, #tpu.memory_space<vmem>>, vector<1x8x128xf32>,
    } else {
    }
    %14 = vector.extract_strided_slice %10 {offsets = [0, 0], sizes = [16, 128], strides = [1, 1]} : vector<32x128xf32> to vector<16x128xf32>
    %c0_9 = arith.constant 0 : index
    %c8 = arith.constant 8 : index
    %c0_10 = arith.constant 0 : index
    %15 = vector.load %arg12[%c0_9, %c8, %c0_10] : memref<2x24x128xf32, #tpu.memory_space<vmem>>, vector<1x16x128xf32>
    %16 = vector.shape_cast %15 : vector<1x16x128xf32> to vector<16x128xf32>
    %17 = vector.shape_cast %14 : vector<16x128xf32> to vector<1x16x128xf32>
    tpu.vector_store %arg12[%c0_9, %c8, %c0_10], %17 {strides = array<i32>} : memref<2x24x128xf32, #tpu.memory_space<vmem>>, vector<1x16x128xf32>,
    %18 = vector.extract_strided_slice %10 {offsets = [16, 0], sizes = [16, 128], strides = [1, 1]} : vector<32x128xf32> to vector<16x128xf32>
    %c1 = arith.constant 1 : index
    %c8_11 = arith.constant 8 : index
    %c0_12 = arith.constant 0 : index
    %19 = vector.load %arg12[%c1, %c8_11, %c0_12] : memref<2x24x128xf32, #tpu.memory_space<vmem>>, vector<1x16x128xf32>
    %20 = vector.shape_cast %19 : vector<1x16x128xf32> to vector<16x128xf32>
    %21 = vector.shape_cast %18 : vector<16x128xf32> to vector<1x16x128xf32>
    tpu.vector_store %arg12[%c1, %c8_11, %c0_12], %21 {strides = array<i32>} : memref<2x24x128xf32, #tpu.memory_space<vmem>>, vector<1x16x128xf32>,
    %cst_13 = arith.constant 0.000000e+00 : f32
    %22 = vector.broadcast %cst_13 : f32 to vector<16x128xf32>
    %c0_14 = arith.constant 0 : index
    %c4 = arith.constant 4 : index
    %c0_15 = arith.constant 0 : index
    %23 = vector.load %arg12[%c0_14, %c4, %c0_15] : memref<2x24x128xf32, #tpu.memory_space<vmem>>, vector<1x16x128xf32>
    %24 = vector.shape_cast %23 : vector<1x16x128xf32> to vector<16x128xf32>
    %c0_16 = arith.constant 0 : index
    %c0_17 = arith.constant 0 : index
    %c0_18 = arith.constant 0 : index
    %25 = vector.load %arg5[%c0_16, %c0_17, %c0_18] : memref<3x128x128xf32, #tpu.memory_space<vmem>>, vector<1x128x128xf32>
    %26 = vector.shape_cast %25 : vector<1x128x128xf32> to vector<128x128xf32>
    %cst_19 = arith.constant dense<0.000000e+00> : vector<16x128xf32>
    %27 = tpu.matmul %24, %26, %cst_19 {dimension_numbers = #tpu.dot_dimension_numbers<[1], [0], [0], [1], [0, 0, 1, 1], [], []>} : vector<16x128xf32>, vector<128x128xf32>, vector<16x128xf32> -> vector<16x128xf32>
    %28 = arith.addf %22, %27 : vector<16x128xf32>
    %c0_20 = arith.constant 0 : index
    %c6 = arith.constant 6 : index
    %c0_21 = arith.constant 0 : index
    %29 = vector.load %arg12[%c0_20, %c6, %c0_21] : memref<2x24x128xf32, #tpu.memory_space<vmem>>, vector<1x16x128xf32>
    %30 = vector.shape_cast %29 : vector<1x16x128xf32> to vector<16x128xf32>
    %c1_22 = arith.constant 1 : index
    %c0_23 = arith.constant 0 : index
    %c0_24 = arith.constant 0 : index
    %31 = vector.load %arg5[%c1_22, %c0_23, %c0_24] : memref<3x128x128xf32, #tpu.memory_space<vmem>>, vector<1x128x128xf32>
    %32 = vector.shape_cast %31 : vector<1x128x128xf32> to vector<128x128xf32>
    %cst_25 = arith.constant dense<0.000000e+00> : vector<16x128xf32>
    %33 = tpu.matmul %30, %32, %cst_25 {dimension_numbers = #tpu.dot_dimension_numbers<[1], [0], [0], [1], [0, 0, 1, 1], [], []>} : vector<16x128xf32>, vector<128x128xf32>, vector<16x128xf32> -> vector<16x128xf32>
    %34 = arith.addf %28, %33 : vector<16x128xf32>
    %c0_26 = arith.constant 0 : index
    %c8_27 = arith.constant 8 : index
    %c0_28 = arith.constant 0 : index
    %35 = vector.load %arg12[%c0_26, %c8_27, %c0_28] : memref<2x24x128xf32, #tpu.memory_space<vmem>>, vector<1x16x128xf32>
    %36 = vector.shape_cast %35 : vector<1x16x128xf32> to vector<16x128xf32>
    %c2 = arith.constant 2 : index
    %c0_29 = arith.constant 0 : index
    %c0_30 = arith.constant 0 : index
    %37 = vector.load %arg5[%c2, %c0_29, %c0_30] : memref<3x128x128xf32, #tpu.memory_space<vmem>>, vector<1x128x128xf32>
    %38 = vector.shape_cast %37 : vector<1x128x128xf32> to vector<128x128xf32>
    %cst_31 = arith.constant dense<0.000000e+00> : vector<16x128xf32>
    %39 = tpu.matmul %36, %38, %cst_31 {dimension_numbers = #tpu.dot_dimension_numbers<[1], [0], [0], [1], [0, 0, 1, 1], [], []>} : vector<16x128xf32>, vector<128x128xf32>, vector<16x128xf32> -> vector<16x128xf32>
    %40 = arith.addf %34, %39 : vector<16x128xf32>
    %c0_32 = arith.constant 0 : index
    %c0_33 = arith.constant 0 : index
    %41 = vector.load %arg6[%c0_32, %c0_33] : memref<1x128xf32, #tpu.memory_space<vmem>>, vector<1x128xf32>
    %42 = vector.broadcast %41 : vector<1x128xf32> to vector<16x128xf32>
    %43 = arith.mulf %40, %42 : vector<16x128xf32>
    %c0_34 = arith.constant 0 : index
    %c0_35 = arith.constant 0 : index
    %44 = vector.load %arg7[%c0_34, %c0_35] : memref<1x128xf32, #tpu.memory_space<vmem>>, vector<1x128xf32>
    %45 = vector.broadcast %44 : vector<1x128xf32> to vector<16x128xf32>
    %46 = arith.addf %43, %45 : vector<16x128xf32>
    %cst_36 = arith.constant 0.000000e+00 : f32
    %47 = vector.broadcast %cst_36 : f32 to vector<16x128xf32>
    %48 = arith.maximumf %46, %47 : vector<16x128xf32>
    %c0_37 = arith.constant 0 : index
    %c0_38 = arith.constant 0 : index
    %49 = vector.load %arg8[%c0_37, %c0_38] : memref<32x128xf32, #tpu.memory_space<vmem>>, vector<16x128xf32>
    %c0_39 = arith.constant 0 : index
    %c0_40 = arith.constant 0 : index
    %50 = vector.load %arg9[%c0_39, %c0_40] : memref<128x128xf32, #tpu.memory_space<vmem>>, vector<128x128xf32>
    %cst_41 = arith.constant dense<0.000000e+00> : vector<16x128xf32>
    %51 = tpu.matmul %49, %50, %cst_41 {dimension_numbers = #tpu.dot_dimension_numbers<[1], [0], [0], [1], [0, 0, 1, 1], [], []>} : vector<16x128xf32>, vector<128x128xf32>, vector<16x128xf32> -> vector<16x128xf32>
    %c0_42 = arith.constant 0 : index
    %c0_43 = arith.constant 0 : index
    %52 = vector.load %arg10[%c0_42, %c0_43] : memref<1x128xf32, #tpu.memory_space<vmem>>, vector<1x128xf32>
    %53 = vector.broadcast %52 : vector<1x128xf32> to vector<16x128xf32>
    %54 = arith.addf %51, %53 : vector<16x128xf32>
    %55 = arith.addf %48, %54 : vector<16x128xf32>
    %cst_44 = arith.constant 0.000000e+00 : f32
    %56 = vector.broadcast %cst_44 : f32 to vector<16x128xf32>
    %57 = arith.maximumf %55, %56 : vector<16x128xf32>
    %c0_45 = arith.constant 0 : index
    %c0_46 = arith.constant 0 : index
    %58 = vector.load %arg11[%c0_45, %c0_46] : memref<32x128xf32, #tpu.memory_space<vmem>>, vector<16x128xf32>
    tpu.vector_store %arg11[%c0_45, %c0_46], %57 {strides = array<i32>} : memref<32x128xf32, #tpu.memory_space<vmem>>, vector<16x128xf32>,
    %cst_47 = arith.constant 0.000000e+00 : f32
    %59 = vector.broadcast %cst_47 : f32 to vector<16x128xf32>
    %c1_48 = arith.constant 1 : index
    %c4_49 = arith.constant 4 : index
    %c0_50 = arith.constant 0 : index
    %60 = vector.load %arg12[%c1_48, %c4_49, %c0_50] : memref<2x24x128xf32, #tpu.memory_space<vmem>>, vector<1x16x128xf32>
    %61 = vector.shape_cast %60 : vector<1x16x128xf32> to vector<16x128xf32>
    %c0_51 = arith.constant 0 : index
    %c0_52 = arith.constant 0 : index
    %c0_53 = arith.constant 0 : index
    %62 = vector.load %arg5[%c0_51, %c0_52, %c0_53] : memref<3x128x128xf32, #tpu.memory_space<vmem>>, vector<1x128x128xf32>
    %63 = vector.shape_cast %62 : vector<1x128x128xf32> to vector<128x128xf32>
    %cst_54 = arith.constant dense<0.000000e+00> : vector<16x128xf32>
    %64 = tpu.matmul %61, %63, %cst_54 {dimension_numbers = #tpu.dot_dimension_numbers<[1], [0], [0], [1], [0, 0, 1, 1], [], []>} : vector<16x128xf32>, vector<128x128xf32>, vector<16x128xf32> -> vector<16x128xf32>
    %65 = arith.addf %59, %64 : vector<16x128xf32>
    %c1_55 = arith.constant 1 : index
    %c6_56 = arith.constant 6 : index
    %c0_57 = arith.constant 0 : index
    %66 = vector.load %arg12[%c1_55, %c6_56, %c0_57] : memref<2x24x128xf32, #tpu.memory_space<vmem>>, vector<1x16x128xf32>
    %67 = vector.shape_cast %66 : vector<1x16x128xf32> to vector<16x128xf32>
    %c1_58 = arith.constant 1 : index
    %c0_59 = arith.constant 0 : index
    %c0_60 = arith.constant 0 : index
    %68 = vector.load %arg5[%c1_58, %c0_59, %c0_60] : memref<3x128x128xf32, #tpu.memory_space<vmem>>, vector<1x128x128xf32>
    %69 = vector.shape_cast %68 : vector<1x128x128xf32> to vector<128x128xf32>
    %cst_61 = arith.constant dense<0.000000e+00> : vector<16x128xf32>
    %70 = tpu.matmul %67, %69, %cst_61 {dimension_numbers = #tpu.dot_dimension_numbers<[1], [0], [0], [1], [0, 0, 1, 1], [], []>} : vector<16x128xf32>, vector<128x128xf32>, vector<16x128xf32> -> vector<16x128xf32>
    %71 = arith.addf %65, %70 : vector<16x128xf32>
    %c1_62 = arith.constant 1 : index
    %c8_63 = arith.constant 8 : index
    %c0_64 = arith.constant 0 : index
    %72 = vector.load %arg12[%c1_62, %c8_63, %c0_64] : memref<2x24x128xf32, #tpu.memory_space<vmem>>, vector<1x16x128xf32>
    %73 = vector.shape_cast %72 : vector<1x16x128xf32> to vector<16x128xf32>
    %c2_65 = arith.constant 2 : index
    %c0_66 = arith.constant 0 : index
    %c0_67 = arith.constant 0 : index
    %74 = vector.load %arg5[%c2_65, %c0_66, %c0_67] : memref<3x128x128xf32, #tpu.memory_space<vmem>>, vector<1x128x128xf32>
    %75 = vector.shape_cast %74 : vector<1x128x128xf32> to vector<128x128xf32>
    %cst_68 = arith.constant dense<0.000000e+00> : vector<16x128xf32>
    %76 = tpu.matmul %73, %75, %cst_68 {dimension_numbers = #tpu.dot_dimension_numbers<[1], [0], [0], [1], [0, 0, 1, 1], [], []>} : vector<16x128xf32>, vector<128x128xf32>, vector<16x128xf32> -> vector<16x128xf32>
    %77 = arith.addf %71, %76 : vector<16x128xf32>
    %c0_69 = arith.constant 0 : index
    %c0_70 = arith.constant 0 : index
    %78 = vector.load %arg6[%c0_69, %c0_70] : memref<1x128xf32, #tpu.memory_space<vmem>>, vector<1x128xf32>
    %79 = vector.broadcast %78 : vector<1x128xf32> to vector<16x128xf32>
    %80 = arith.mulf %77, %79 : vector<16x128xf32>
    %c0_71 = arith.constant 0 : index
    %c0_72 = arith.constant 0 : index
    %81 = vector.load %arg7[%c0_71, %c0_72] : memref<1x128xf32, #tpu.memory_space<vmem>>, vector<1x128xf32>
    %82 = vector.broadcast %81 : vector<1x128xf32> to vector<16x128xf32>
    %83 = arith.addf %80, %82 : vector<16x128xf32>
    %cst_73 = arith.constant 0.000000e+00 : f32
    %84 = vector.broadcast %cst_73 : f32 to vector<16x128xf32>
    %85 = arith.maximumf %83, %84 : vector<16x128xf32>
    %c16 = arith.constant 16 : index
    %c0_74 = arith.constant 0 : index
    %86 = vector.load %arg8[%c16, %c0_74] : memref<32x128xf32, #tpu.memory_space<vmem>>, vector<16x128xf32>
    %c0_75 = arith.constant 0 : index
    %c0_76 = arith.constant 0 : index
    %87 = vector.load %arg9[%c0_75, %c0_76] : memref<128x128xf32, #tpu.memory_space<vmem>>, vector<128x128xf32>
    %cst_77 = arith.constant dense<0.000000e+00> : vector<16x128xf32>
    %88 = tpu.matmul %86, %87, %cst_77 {dimension_numbers = #tpu.dot_dimension_numbers<[1], [0], [0], [1], [0, 0, 1, 1], [], []>} : vector<16x128xf32>, vector<128x128xf32>, vector<16x128xf32> -> vector<16x128xf32>
    %c0_78 = arith.constant 0 : index
    %c0_79 = arith.constant 0 : index
    %89 = vector.load %arg10[%c0_78, %c0_79] : memref<1x128xf32, #tpu.memory_space<vmem>>, vector<1x128xf32>
    %90 = vector.broadcast %89 : vector<1x128xf32> to vector<16x128xf32>
    %91 = arith.addf %88, %90 : vector<16x128xf32>
    %92 = arith.addf %85, %91 : vector<16x128xf32>
    %cst_80 = arith.constant 0.000000e+00 : f32
    %93 = vector.broadcast %cst_80 : f32 to vector<16x128xf32>
    %94 = arith.maximumf %92, %93 : vector<16x128xf32>
    %c16_81 = arith.constant 16 : index
    %c0_82 = arith.constant 0 : index
    %95 = vector.load %arg11[%c16_81, %c0_82] : memref<32x128xf32, #tpu.memory_space<vmem>>, vector<16x128xf32>
    tpu.vector_store %arg11[%c16_81, %c0_82], %94 {strides = array<i32>} : memref<32x128xf32, #tpu.memory_space<vmem>>, vector<16x128xf32>,
    return
  }
  func.func @transform_0(%arg0: i32) -> (i32, i32) {
    %c0_i32 = arith.constant 0 : i32
    %c0_i32_0 = arith.constant 0 : i32
    return %arg0, %c0_i32 : i32, i32
  }
  func.func @transform_1(%arg0: i32) -> (i32, i32) {
    %c0_i32 = arith.constant 0 : i32
    %c0_i32_0 = arith.constant 0 : i32
    %c0_i32_1 = arith.constant 0 : i32
    return %c0_i32, %c0_i32_0 : i32, i32
  }
  func.func @transform_2(%arg0: i32) -> (i32, i32) {
    %c0_i32 = arith.constant 0 : i32
    %c0_i32_0 = arith.constant 0 : i32
    %c0_i32_1 = arith.constant 0 : i32
    return %c0_i32, %c0_i32_0 : i32, i32
  }
  func.func @transform_3(%arg0: i32) -> (i32, i32) {
    %c0_i32 = arith.constant 0 : i32
    %c0_i32_0 = arith.constant 0 : i32
    %c0_i32_1 = arith.constant 0 : i32
    return %c0_i32, %c0_i32_0 : i32, i32
  }
  func.func @transform_4(%arg0: i32) -> (i32, i32, i32) {
    %c0_i32 = arith.constant 0 : i32
    %c0_i32_0 = arith.constant 0 : i32
    %c0_i32_1 = arith.constant 0 : i32
    %c0_i32_2 = arith.constant 0 : i32
    return %c0_i32, %c0_i32_0, %c0_i32_1 : i32, i32, i32
  }
  func.func @transform_5(%arg0: i32) -> (i32, i32) {
    %c0_i32 = arith.constant 0 : i32
    %c0_i32_0 = arith.constant 0 : i32
    %c0_i32_1 = arith.constant 0 : i32
    return %c0_i32, %c0_i32_0 : i32, i32
  }
  func.func @transform_6(%arg0: i32) -> (i32, i32) {
    %c0_i32 = arith.constant 0 : i32
    %c0_i32_0 = arith.constant 0 : i32
    %c0_i32_1 = arith.constant 0 : i32
    return %c0_i32, %c0_i32_0 : i32, i32
  }
  func.func @transform_7(%arg0: i32) -> (i32, i32) {
    %c0_i32 = arith.constant 0 : i32
    %c0_i32_0 = arith.constant 0 : i32
    return %arg0, %c0_i32 : i32, i32
  }
  func.func @transform_8(%arg0: i32) -> (i32, i32) {
    %c0_i32 = arith.constant 0 : i32
    %c0_i32_0 = arith.constant 0 : i32
    %c0_i32_1 = arith.constant 0 : i32
    return %c0_i32, %c0_i32_0 : i32, i32
  }
  func.func @transform_9(%arg0: i32) -> (i32, i32) {
    %c0_i32 = arith.constant 0 : i32
    %c0_i32_0 = arith.constant 0 : i32
    %c0_i32_1 = arith.constant 0 : i32
    return %c0_i32, %c0_i32_0 : i32, i32
  }
  func.func @transform_10(%arg0: i32) -> (i32, i32) {
    %c0_i32 = arith.constant 0 : i32
    %c0_i32_0 = arith.constant 0 : i32
    return %arg0, %c0_i32 : i32, i32
  }
}

</mosaic_0001>

<bundles_post_ra>
// kernel: tpu_custom_call.1
= control target key start
LH: loop header
LB: loop body
LE: loop exit
PB: predicated region body
PF: predicated region fallthrough
CT: control target
= control target key end

     0   :  { %15 = vsyncpa [#allocation4], 0  ;;  %s1155_s0 = inlined_call_operand.hbm [shape: f32[32,128], index: 0, kind: input, shape index: {}]   ;;  %s1156_s1 = inlined_call_operand.hbm [shape: f32[128,128], index: 1, kind: input, shape index: {}]   ;;  %s1157_s2 = inlined_call_operand.vmem [shape: f32[1,128], index: 2, kind: input, shape index: {}]   ;;  %s1158_s3 = inlined_call_operand.vmem [shape: f32[1,128], index: 3, kind: input, shape index: {}]   ;;  %s1159_s4 = inlined_call_operand.hbm [shape: f32[3,128,128], index: 4, kind: input, shape index: {}]   ;;  %s1160_s5 = inlined_call_operand.vmem [shape: f32[1,128], index: 5, kind: input, shape index: {}]   ;;  %s1161_s6 = inlined_call_operand.vmem [shape: f32[1,128], index: 6, kind: input, shape index: {}]   ;;  %s1162_s7 = inlined_call_operand.hbm [shape: f32[32,128], index: 7, kind: input, shape index: {}]   ;;  %s1163_s8 = inlined_call_operand.hbm [shape: f32[128,128], index: 8, kind: input, shape index: {}]   ;;  %s1164_s9 = inlined_call_operand.vmem [shape: f32[1,128], index: 9, kind: input, shape index: {}]   ;;  %s1165_s10 = inlined_call_operand.hbm [shape: f32[32,128], index: 10, kind: output, shape index: {}]  }
   0x1   :  { %16 = vsyncpa [#allocation7], 0 }
   0x2   :  { %17 = vsyncpa [#allocation10], 0 }
   0x3   :  { %18 = vsyncpa [#allocation5], 0  ;;  %s36_s15 = sshll.u32 %s1156_s1, 4  ;;  %s783_s16 = smov [#allocation6]   ;;  %s37_s15 = int_to_ptr.hbm [resolvable:$true] %s36_s15 }
   0x4   :  { %s38_s17 = sshll.u32 %s783_s16, 4  ;;  %s70_s20 = sshll.u32 %s1162_s7, 4  ;;  %s39_s17 = int_to_ptr.vmem [resolvable:$true] %s38_s17  ;;  %s71_s20 = int_to_ptr.hbm [resolvable:$true] %s70_s20 }
   0x5   :  { %s784_s21 = smov 128   ;;  %s785_s22 = smov 8  }
   0x6   :  { %44 = dma.hbm_to_vmem [thread:$0]  %s37_s15, 2048, %s39_s17, [#allocation7], %s784_s21, %s784_s21, %s785_s22  }
   0x7   :  { %s786_s23 = smov [#allocation9]   ;;  %s23_s1 = sshll.u32 %s1155_s0, 4  ;;  %s24_s1 = int_to_ptr.hbm [resolvable:$true] %s23_s1 }
   0x8   :  { %s72_s24 = sshll.u32 %s786_s23, 4  ;;  %s53_s28 = sshll.u32 %s1159_s4, 4  ;;  %s73_s24 = int_to_ptr.vmem [resolvable:$true] %s72_s24  ;;  %s54_s28 = int_to_ptr.hbm [resolvable:$true] %s53_s28 }
   0x9   :  { %78 = dma.hbm_to_vmem [thread:$0]  %s71_s20, 512, %s73_s24, [#allocation10], %s784_s21, %s784_s21, %s785_s22  }
   0xa   :  { %s787_s29 = smov [#allocation3]   ;;  %s788_s11 = smov [#allocation8]  }
   0xb   :  { %s25_s30 = sshll.u32 %s787_s29, 4  ;;  %s55_s0 = sshll.u32 %s788_s11, 4  ;;  %s26_s30 = int_to_ptr.vmem [resolvable:$true] %s25_s30  ;;  %s56_s0 = int_to_ptr.vmem [resolvable:$true] %s55_s0 }
   0xc   :  { %31 = dma.hbm_to_vmem [thread:$0]  %s24_s1, 512, %s26_s30, [#allocation4], %s784_s21, %s784_s21, %s785_s22  }
   0xd   :  { %s83_s14 = sshll.u32 %s1163_s8, 4  ;;  %s789_s4 = smov [#allocation11]   ;;  %s84_s14 = int_to_ptr.hbm [resolvable:$true] %s83_s14 }
   0xe   :  { %61 = dma.hbm_to_vmem [thread:$0]  %s54_s28, 6144, %s56_s0, [#allocation7], %s784_s21, %s784_s21, %s785_s22  }
   0xf   :  { %s85_s15 = sshll.u32 %s789_s4, 4  ;;  %s86_s15 = int_to_ptr.vmem [resolvable:$true] %s85_s15 }
  0x10   :  { %91 = dma.hbm_to_vmem [thread:$0]  %s84_s14, 2048, %s86_s15, [#allocation10], %s784_s21, %s784_s21, %s785_s22  }
  0x11   :  { %775 = dma.done.wait [#allocation4], 512  }
  0x12   :  { %776 = vsyncadd [#allocation4], 4294966784 }
  0x13   :  { %777 = dma.done.wait [#allocation7], 8192  }
  0x14   :  { %778 = vsyncadd [#allocation7], 4294959104 }
  0x15   :  { %779 = dma.done.wait [#allocation10], 2560  }
  0x16   :  { %780 = vsyncadd [#allocation10], 4294964736  ;;  %v133_v0 = vld [vmem:[#allocation6 + $0x78] sm:$0xff]  ;;  %v132_v1 = vld [vmem:[#allocation6 + $0x70] sm:$0xff]  ;;  %s583_s30 = sshll.u32 %s1165_s10, 4  ;;  %s584_s30 = int_to_ptr.hbm [resolvable:$true] %s583_s30 }
  0x17   :  { %134 = vmatpush.msra.mxu0 %v133_v0  ;;  %v131_v2 = vld [vmem:[#allocation6 + $0x68] sm:$0xff]  ;;  %v130_v3 = vld [vmem:[#allocation6 + $0x60] sm:$0xff]  ;;  %v129_v4 = vld [vmem:[#allocation6 + $0x58] sm:$0xff] }
  0x18   :  { %v128_v5 = vld [vmem:[#allocation6 + $0x50] sm:$0xff]  ;;  %v127_v6 = vld [vmem:[#allocation6 + $0x48] sm:$0xff]  ;;  %v126_v7 = vld [vmem:[#allocation6 + $0x40] sm:$0xff] }
  0x19   :  { %135 = vmatpush.msra.mxu0 %v132_v1  ;;  %v125_v8 = vld [vmem:[#allocation6 + $0x38] sm:$0xff]  ;;  %v124_v9 = vld [vmem:[#allocation6 + $0x30] sm:$0xff]  ;;  %v123_v10 = vld [vmem:[#allocation6 + $0x28] sm:$0xff] }
  0x1a   :  { %v122_v11 = vld [vmem:[#allocation6 + $0x20] sm:$0xff]  ;;  %v121_v12 = vld [vmem:[#allocation6 + $0x18] sm:$0xff]  ;;  %v120_v13 = vld [vmem:[#allocation6 + $0x10] sm:$0xff] }
  0x1b   :  { %136 = vmatpush.msra.mxu0 %v131_v2  ;;  %v877_v14 = vld [vmem:[#allocation8 + $0xf8] sm:$0xff]  ;;  %v879_v15 = vld [vmem:[#allocation8 + $0xf0] sm:$0xff]  ;;  %v119_v16 = vld [vmem:[#allocation6 + $0x8] sm:$0xff] }
  0x1c   :  { %232 = vmatpush.msra.mxu1 %v877_v14  ;;  %v882_v17 = vld [vmem:[#allocation8 + $0x78] sm:$0xff]  ;;  %v884_v18 = vld [vmem:[#allocation8 + $0xe8] sm:$0xff]  ;;  %v889_v20 = vld [vmem:[#allocation8 + $0x70] sm:$0xff] }
  0x1d   :  { %137 = vmatpush.msra.mxu0 %v130_v3  ;;  %255 = vmatpush.msra.mxu2 %v882_v17  ;;  %v887_v19 = vld [vmem:[#allocation8 + $0x178] sm:$0xff]  ;;  %v892_v21 = vld [vmem:[#allocation8 + $0x170] sm:$0xff]  ;;  %v894_v22 = vld [vmem:[#allocation8 + $0x68] sm:$0xff] }
  0x1e   :  { %233 = vmatpush.msra.mxu1 %v879_v15  ;;  %v118_v23 = vld [vmem:[#allocation6] sm:$0xff]  ;;  %297 = vmatpush.msra.mxu3 %v887_v19  ;;  %v901_v26 = vld [vmem:[#allocation8 + $0x168] sm:$0xff]  ;;  %v903_v27 = vld [vmem:[#allocation8 + $0xd8] sm:$0xff] }
  0x1f   :  { %138 = vmatpush.msra.mxu0 %v129_v4  ;;  %v896_v24 = vld [vmem:[#allocation8 + $0xe0] sm:$0xff]  ;;  %256 = vmatpush.msra.mxu2 %v889_v20  ;;  %v912_v30 = vld [vmem:[#allocation8 + $0xd0] sm:$0xff]  ;;  %v915_v31 = vld [vmem:[#allocation8 + $0x58] sm:$0xff] }
  0x20   :  { %v114_v25 = vld [vmem:[#allocation3] sm:$0xff]  ;;  %234 = vmatpush.msra.mxu1 %v884_v18  ;;  %298 = vmatpush.msra.mxu3 %v892_v21  ;;  %v919_v32 = vld [vmem:[#allocation8 + $0x158] sm:$0xff]  ;;  %v923_v34 = vld [vmem:[#allocation8 + $0xc8] sm:$0xff] }
  0x21   :  { %139 = vmatpush.msra.mxu0 %v128_v5  ;;  %257 = vmatpush.msra.mxu2 %v894_v22  ;;  %v907_v28 = vld [vmem:[#allocation8 + $0x60] sm:$0xff]  ;;  %v921_v33 = vld [vmem:[#allocation11 + $0x78] sm:$0xff]  ;;  %v926_v35 = vld [vmem:[#allocation8 + $0x50] sm:$0xff] }
  0x22   :  { %235 = vmatpush.msra.mxu1 %v896_v24  ;;  %v910_v29 = vld [vmem:[#allocation8 + $0x160] sm:$0xff]  ;;  %299 = vmatpush.msra.mxu3 %v901_v26  ;;  %v929_v36 = vld [vmem:[#allocation11 + $0x70] sm:$0xff]  ;;  %v938_v39 = vld [vmem:[#allocation8 + $0x48] sm:$0xff] }
  0x23   :  { %140 = vmatpush.msra.mxu0 %v127_v6  ;;  %258 = vmatpush.msra.mxu2 %v907_v28  ;;  %v933_v37 = vld [vmem:[#allocation8 + $0x150] sm:$0xff]  ;;  %v935_v38 = vld [vmem:[#allocation8 + $0xc0] sm:$0xff]  ;;  %v941_v40 = vld [vmem:[#allocation11 + $0x68] sm:$0xff] }
  0x24   :  { %236 = vmatpush.msra.mxu1 %v903_v27  ;;  %300 = vmatpush.msra.mxu3 %v910_v29  ;;  %v115_v41 = vld [vmem:[#allocation3 + $0x8] sm:$0xff]  ;;  %v947_v43 = vld [vmem:[#allocation8 + $0xb8] sm:$0xff]  ;;  %v950_v44 = vld [vmem:[#allocation8 + $0x40] sm:$0xff] }
  0x25   :  { %141 = vmatpush.msra.mxu0 %v126_v7  ;;  %259 = vmatpush.msra.mxu2 %v915_v31  ;;  %v945_v42 = vld [vmem:[#allocation8 + $0x148] sm:$0xff]  ;;  %v955_v45 = vld [vmem:[#allocation8 + $0x140] sm:$0xff]  ;;  %v959_v47 = vld [vmem:[#allocation8 + $0xb0] sm:$0xff] }
  0x26   :  { %237 = vmatpush.msra.mxu1 %v912_v30  ;;  %301 = vmatpush.msra.mxu3 %v919_v32  ;;  %v957_v46 = vld [vmem:[#allocation11 + $0x60] sm:$0xff]  ;;  %v962_v48 = vld [vmem:[#allocation8 + $0x38] sm:$0xff]  ;;  %v970_v51 = vld [vmem:[#allocation8 + $0xa8] sm:$0xff] }
  0x27   :  { %142 = vmatpush.msra.mxu0 %v125_v8  ;;  %260 = vmatpush.msra.mxu2 %v926_v35  ;;  %v966_v49 = vld [vmem:[#allocation8 + $0x138] sm:$0xff]  ;;  %v973_v52 = vld [vmem:[#allocation8 + $0x30] sm:$0xff]  ;;  %v982_v55 = vld [vmem:[#allocation8 + $0xa0] sm:$0xff] }
  0x28   :  { %238 = vmatpush.msra.mxu1 %v923_v34  ;;  %302 = vmatpush.msra.mxu3 %v933_v37  ;;  %v968_v50 = vld [vmem:[#allocation11 + $0x58] sm:$0xff]  ;;  %v978_v53 = vld [vmem:[#allocation8 + $0x130] sm:$0xff]  ;;  %v985_v56 = vld [vmem:[#allocation8 + $0x28] sm:$0xff] }
  0x29   :  { %143 = vmatpush.msra.mxu0 %v124_v9  ;;  %261 = vmatpush.msra.mxu2 %v938_v39  ;;  %v980_v54 = vld [vmem:[#allocation11 + $0x50] sm:$0xff]  ;;  %v990_v58 = vld [vmem:[#allocation8 + $0x128] sm:$0xff]  ;;  %v992_v59 = vld [vmem:[#allocation8 + $0x98] sm:$0xff] }
  0x2a   :  { %239 = vmatpush.msra.mxu1 %v935_v38  ;;  %303 = vmatpush.msra.mxu3 %v945_v42  ;;  %v116_v57 = vld [vmem:[#allocation3 + $0x10] sm:$0xff]  ;;  %v995_v60 = vld [vmem:[#allocation8 + $0x20] sm:$0xff]  ;;  %v1002_v62 = vld [vmem:[#allocation11 + $0x48] sm:$0xff] }
  0x2b   :  { %144 = vmatpush.msra.mxu0 %v123_v10  ;;  %262 = vmatpush.msra.mxu2 %v950_v44  ;;  %v1000_v61 = vld [vmem:[#allocation8 + $0x120] sm:$0xff]  ;;  %v1004_v63 = vld [vmem:[#allocation8 + $0x90] sm:$0xff]  ;;  %v1007_v0 = vld [vmem:[#allocation8 + $0x18] sm:$0xff] }
  0x2c   :  { %240 = vmatpush.msra.mxu1 %v947_v43  ;;  %304 = vmatpush.msra.mxu3 %v955_v45  ;;  %v1011_v1 = vld [vmem:[#allocation8 + $0x118] sm:$0xff]  ;;  %v1013_v2 = vld [vmem:[#allocation11 + $0x40] sm:$0xff]  ;;  %v1015_v3 = vld [vmem:[#allocation8 + $0x88] sm:$0xff] }
  0x2d   :  { %145 = vmatpush.msra.mxu0 %v122_v11  ;;  %263 = vmatpush.msra.mxu2 %v962_v48  ;;  %v1018_v4 = vld [vmem:[#allocation8 + $0x10] sm:$0xff]  ;;  %v1023_v6 = vld [vmem:[#allocation11 + $0x38] sm:$0xff]  ;;  %v216_v7 = vld [vmem:[#allocation8 + $0x80] sm:$0xff] }
  0x2e   :  { %241 = vmatpush.msra.mxu1 %v959_v47  ;;  %305 = vmatpush.msra.mxu3 %v966_v49  ;;  %v283_v5 = vld [vmem:[#allocation8 + $0x110] sm:$0xff]  ;;  %v198_v8 = vld [vmem:[#allocation8 + $0x8] sm:$0xff]  ;;  %v117_v9 = vld [vmem:[#allocation3 + $0x18] sm:$0xff] }
  0x2f   :  { %146 = vmatpush.msra.mxu0 %v121_v12  ;;  %264 = vmatpush.msra.mxu2 %v973_v52  ;;  %v282_v10 = vld [vmem:[#allocation8 + $0x108] sm:$0xff]  ;;  %v197_v11 = vld [vmem:[#allocation8] sm:$0xff] }
  0x30   :  { %242 = vmatpush.msra.mxu1 %v970_v51  ;;  %306 = vmatpush.msra.mxu3 %v978_v53  ;;  %v281_v12 = vld [vmem:[#allocation8 + $0x100] sm:$0xff] }
  0x31   :  { %147 = vmatpush.msra.mxu0 %v120_v13  ;;  %265 = vmatpush.msra.mxu2 %v985_v56  ;;  %v1072_v13 = vld [vmem:[#allocation11 + $0x30] sm:$0xff] }
  0x32   :  { %243 = vmatpush.msra.mxu1 %v982_v55  ;;  %307 = vmatpush.msra.mxu3 %v990_v58 }
  0x33   :  { %148 = vmatpush.msra.mxu0 %v119_v16  ;;  %266 = vmatpush.msra.mxu2 %v995_v60  ;;  %v1081_v16 = vld [vmem:[#allocation11 + $0x18] sm:$0xff] }
  0x34   :  { %244 = vmatpush.msra.mxu1 %v992_v59  ;;  %308 = vmatpush.msra.mxu3 %v1000_v61 }
  0x35   :  { %149 = vmatpush.msra.mxu0 %v118_v23  ;;  %267 = vmatpush.msra.mxu2 %v1007_v0  ;;  %v624_v23 = vld [vmem:[%s1158_s3] ss:$0 sm:$0xff] }
  0x36   :  { %150 = vmatmul.f32.vlgmr.msra.gmra.mxu0 %v114_v25  ;;  %245 = vmatpush.msra.mxu1 %v1004_v63 }
  0x37   :  { %358 = vmatpush.msrb.mxu0 %v921_v33  ;;  %309 = vmatpush.msra.mxu3 %v1011_v1 }
  0x38   :  { %246 = vmatpush.msra.mxu1 %v1015_v3  ;;  %268 = vmatpush.msra.mxu2 %v1018_v4 }
  0x39   :  { %359 = vmatpush.msrb.mxu0 %v929_v36  ;;  %310 = vmatpush.msra.mxu3 %v283_v5 }
  0x3a   :  { %247 = vmatpush.msra.mxu1 %v216_v7  ;;  %269 = vmatpush.msra.mxu2 %v198_v8 }
  0x3b   :  { %360 = vmatpush.msrb.mxu0 %v941_v40  ;;  %311 = vmatpush.msra.mxu3 %v282_v10 }
  0x3c   :  { %423 = vmatpush.msrb.mxu1 %v877_v14  ;;  %270 = vmatpush.msra.mxu2 %v197_v11  ;;  %v1075_v14 = vld [vmem:[#allocation11 + $0x28] sm:$0xff] }
  0x3d   :  { %361 = vmatpush.msrb.mxu0 %v957_v46  ;;  %312 = vmatpush.msra.mxu3 %v281_v12 }
  0x3e   :  { %153 = vmatmul.f32.gmra.mxu0 %v115_v41  ;;  %424 = vmatpush.msrb.mxu1 %v879_v15  ;;  %v1078_v15 = vld [vmem:[#allocation11 + $0x20] sm:$0xff] }
  0x3f   :  { %362 = vmatpush.msrb.mxu0 %v968_v50  ;;  %446 = vmatpush.msrb.mxu2 %v882_v17  ;;  %v790_v17 = vmov 0.0  }
  0x40   :  { %425 = vmatpush.msrb.mxu1 %v884_v18  ;;  %487 = vmatpush.msrb.mxu3 %v887_v19  ;;  %187 = vst [vmem:[#allocation2] sm:$0xff] %v790_v17  ;;  %v1084_v18 = vld [vmem:[#allocation11 + $0x10] sm:$0xff]  ;;  %v1087_v19 = vld [vmem:[#allocation11 + $0x8] sm:$0xff] }
  0x41   :  { %363 = vmatpush.msrb.mxu0 %v980_v54  ;;  %447 = vmatpush.msrb.mxu2 %v889_v20  ;;  %189 = vst [vmem:[#allocation2 + $0x18] sm:$0xff] %v790_v17  ;;  %v1090_v20 = vld [vmem:[#allocation11] sm:$0xff] }
  0x42   :  { %426 = vmatpush.msrb.mxu1 %v896_v24  ;;  %488 = vmatpush.msrb.mxu3 %v892_v21  ;;  %v623_v21 = vld [vmem:[%s1157_s2] ss:$0 sm:$0xff] }
  0x43   :  { %364 = vmatpush.msrb.mxu0 %v1002_v62  ;;  %448 = vmatpush.msrb.mxu2 %v894_v22  ;;  %v336_v22 = vld [vmem:[#allocation9] sm:$0xff] }
  0x44   :  { %427 = vmatpush.msrb.mxu1 %v903_v27  ;;  %489 = vmatpush.msrb.mxu3 %v901_v26  ;;  %v337_v27 = vld [vmem:[#allocation9 + $0x8] sm:$0xff] }
  0x45   :  { %365 = vmatpush.msrb.mxu0 %v1013_v2  ;;  %449 = vmatpush.msrb.mxu2 %v907_v28 }
  0x46   :  { %156 = vmatmul.f32.gmra.mxu0 %v116_v57  ;;  %428 = vmatpush.msrb.mxu1 %v912_v30 }
  0x47   :  { %366 = vmatpush.msrb.mxu0 %v1023_v6  ;;  %490 = vmatpush.msrb.mxu3 %v910_v29 }
  0x48   :  { %450 = vmatpush.msrb.mxu2 %v915_v31  ;;  %429 = vmatpush.msrb.mxu1 %v923_v34 }
  0x49   :  { %491 = vmatpush.msrb.mxu3 %v919_v32  ;;  %367 = vmatpush.msrb.mxu0 %v1072_v13  ;;  %v526_v32 = vld [vmem:[#allocation9 + $0x10] sm:$0xff] }
  0x4a   :  { %451 = vmatpush.msrb.mxu2 %v926_v35  ;;  %430 = vmatpush.msrb.mxu1 %v935_v38 }
  0x4b   :  { %492 = vmatpush.msrb.mxu3 %v933_v37  ;;  %368 = vmatpush.msrb.mxu0 %v1075_v14 }
  0x4c   :  { %452 = vmatpush.msrb.mxu2 %v938_v39  ;;  %431 = vmatpush.msrb.mxu1 %v947_v43 }
  0x4d   :  { %493 = vmatpush.msrb.mxu3 %v945_v42  ;;  %369 = vmatpush.msrb.mxu0 %v1078_v15 }
  0x4e   :  { %159 = vmatmul.f32.gmra.mxu0 %v117_v9  ;;  %453 = vmatpush.msrb.mxu2 %v950_v44 }
  0x4f   :  { %432 = vmatpush.msrb.mxu1 %v959_v47  ;;  %494 = vmatpush.msrb.mxu3 %v955_v45 }
  0x50   :  { %454 = vmatpush.msrb.mxu2 %v962_v48  ;;  %370 = vmatpush.msrb.mxu0 %v1081_v16 }
  0x51   :  { %433 = vmatpush.msrb.mxu1 %v970_v51  ;;  %495 = vmatpush.msrb.mxu3 %v966_v49 }
  0x52   :  { %455 = vmatpush.msrb.mxu2 %v973_v52  ;;  %371 = vmatpush.msrb.mxu0 %v1084_v18 }
  0x53   :  { %434 = vmatpush.msrb.mxu1 %v982_v55  ;;  %496 = vmatpush.msrb.mxu3 %v978_v53 }
  0x54   :  { %456 = vmatpush.msrb.mxu2 %v985_v56  ;;  %372 = vmatpush.msrb.mxu0 %v1087_v19  ;;  %v625_v56 = vld [vmem:[%s1160_s5] ss:$0 sm:$0xff] }
  0x55   :  { %435 = vmatpush.msrb.mxu1 %v992_v59  ;;  %497 = vmatpush.msrb.mxu3 %v990_v58  ;;  %v626_v59 = vld [vmem:[%s1161_s6] ss:$0 sm:$0xff] }
  0x56   :  { %457 = vmatpush.msrb.mxu2 %v995_v60  ;;  %373 = vmatpush.msrb.mxu0 %v1090_v20  ;;  %v627_v60 = vld [vmem:[%s1164_s9] ss:$0 sm:$0xff] }
  0x57   :  { %436 = vmatpush.msrb.mxu1 %v1004_v63  ;;  %498 = vmatpush.msrb.mxu3 %v1000_v61 }
  0x58   :  { %458 = vmatpush.msrb.mxu2 %v1007_v0  ;;  %548 = vmatpush.msra.mxu0 %v921_v33 }
  0x59   :  { %437 = vmatpush.msrb.mxu1 %v1015_v3  ;;  %499 = vmatpush.msrb.mxu3 %v1011_v1 }
  0x5a   :  { %459 = vmatpush.msrb.mxu2 %v1018_v4  ;;  %549 = vmatpush.msra.mxu0 %v929_v36 }
  0x5b   :  { %438 = vmatpush.msrb.mxu1 %v216_v7  ;;  %500 = vmatpush.msrb.mxu3 %v283_v5 }
  0x5c   :  { %460 = vmatpush.msrb.mxu2 %v198_v8  ;;  %550 = vmatpush.msra.mxu0 %v941_v40 }
  0x5d   :  { %501 = vmatpush.msrb.mxu3 %v282_v10  ;;  %374 = vmatmul.f32.vlgmr.msrb.gmra.mxu0 %v336_v22 }
  0x5e   :  { %461 = vmatpush.msrb.mxu2 %v197_v11  ;;  %551 = vmatpush.msra.mxu0 %v957_v46 }
  0x5f   :  { %502 = vmatpush.msrb.mxu3 %v281_v12 }
  0x60   :  { %552 = vmatpush.msra.mxu0 %v968_v50 }
  0x62   :  { %553 = vmatpush.msra.mxu0 %v980_v54 }
  0x64   :  { %554 = vmatpush.msra.mxu0 %v1002_v62 }
  0x65   :  { %377 = vmatmul.f32.gmra.mxu0 %v337_v27 }
  0x66   :  { %555 = vmatpush.msra.mxu0 %v1013_v2 }
  0x68   :  { %556 = vmatpush.msra.mxu0 %v1023_v6 }
  0x6a   :  { %557 = vmatpush.msra.mxu0 %v1072_v13 }
  0x6c   :  { %558 = vmatpush.msra.mxu0 %v1075_v14 }
  0x6e   :  { %559 = vmatpush.msra.mxu0 %v1078_v15 }
  0x70   :  { %560 = vmatpush.msra.mxu0 %v1081_v16 }
  0x72   :  { %561 = vmatpush.msra.mxu0 %v1084_v18 }
  0x74   :  { %562 = vmatpush.msra.mxu0 %v1087_v19 }
  0x76   :  { %563 = vmatpush.msra.mxu0 %v1090_v20 }
  0x77   :  { %564 = vmatmul.f32.vlgmr.msra.gmra.mxu0 %v526_v32 }
  0xb3   :  { %v151_v24 = vpop.f32.mrf.mxu0 }
  0xb4   :  { %v167_v25 = vmul.f32 %v623_v21, %v151_v24 }
  0xb6   :  { %v175_v26 = vadd.f32 %v624_v23, %v167_v25 }
  0xb8   :  { %v179_v28 = vmax.f32 %v175_v26, 0.0 }
  0xba   :  { %190 = vst [vmem:[#allocation2 + $0x8] sm:$0xff] %v179_v28  ;;  %313 = vmatmul.f32.vlgmr.msra.gmra.mxu3 %v179_v28 }
  0xbb   :  { %v154_v29 = vpop.f32.mrf.mxu0 }
  0xbc   :  { %v168_v30 = vmul.f32 %v623_v21, %v154_v29 }
  0xbe   :  { %v176_v31 = vadd.f32 %v624_v23, %v168_v30 }
  0xc0   :  { %v180_v34 = vmax.f32 %v176_v31, 0.0 }
  0xc1   :  { %v213_v35 = vld [vmem:[#allocation2 + $0x6] sm:$0xff] }
  0xc2   :  { %v195_v37 = vld [vmem:[#allocation2 + $0x4] sm:$0xff]  ;;  %191 = vst [vmem:[#allocation2 + $0x10] sm:$0xff] %v180_v34  ;;  %248 = vmatmul.f32.vlgmr.msra.gmra.mxu1 %v213_v35  ;;  %316 = vmatmul.f32.gmra.mxu3 %v180_v34 }
  0xc3   :  { %271 = vmatmul.f32.vlgmr.msra.gmra.mxu2 %v195_v37  ;;  %v157_v38 = vpop.f32.mrf.mxu0  ;;  %598 = vmatpush.msra.mxu1 %v921_v33 }
  0xc4   :  { %v169_v39 = vmul.f32 %v623_v21, %v157_v38 }
  0xc5   :  { %599 = vmatpush.msra.mxu1 %v929_v36 }
  0xc6   :  { %v177_v41 = vadd.f32 %v624_v23, %v169_v39 }
  0xc7   :  { %600 = vmatpush.msra.mxu1 %v941_v40 }
  0xc8   :  { %v181_v42 = vmax.f32 %v177_v41, 0.0 }
  0xc9   :  { %v214_v43 = vld [vmem:[#allocation2 + $0xe] sm:$0xff]  ;;  %601 = vmatpush.msra.mxu1 %v957_v46 }
  0xca   :  { %v196_v44 = vld [vmem:[#allocation2 + $0xc] sm:$0xff]  ;;  %193 = vst [vmem:[#allocation2 + $0x20] sm:$0xff] %v181_v42  ;;  %251 = vmatmul.f32.gmra.mxu1 %v214_v43  ;;  %503 = vmatmul.f32.vlgmr.msrb.gmra.mxu3 %v181_v42 }
  0xcb   :  { %274 = vmatmul.f32.gmra.mxu2 %v196_v44  ;;  %v160_v45 = vpop.f32.mrf.mxu0  ;;  %602 = vmatpush.msra.mxu1 %v968_v50  ;;  %v527_v50 = vld [vmem:[#allocation9 + $0x18] sm:$0xff] }
  0xcc   :  { %v170_v33 = vmul.f32 %v623_v21, %v160_v45 }
  0xcd   :  { %603 = vmatpush.msra.mxu1 %v980_v54 }
  0xce   :  { %v178_v47 = vadd.f32 %v624_v23, %v170_v33 }
  0xcf   :  { %604 = vmatpush.msra.mxu1 %v1002_v62 }
  0xd0   :  { %v182_v36 = vmax.f32 %v178_v47, 0.0 }
  0xd1   :  { %v405_v40 = vld [vmem:[#allocation2 + $0x1e] sm:$0xff]  ;;  %605 = vmatpush.msra.mxu1 %v1013_v2 }
  0xd2   :  { %v387_v48 = vld [vmem:[#allocation2 + $0x1c] sm:$0xff]  ;;  %194 = vst [vmem:[#allocation2 + $0x28] sm:$0xff] %v182_v36  ;;  %439 = vmatmul.f32.vlgmr.msrb.gmra.mxu1 %v405_v40  ;;  %506 = vmatmul.f32.gmra.mxu3 %v182_v36 }
  0xd3   :  { %462 = vmatmul.f32.vlgmr.msrb.gmra.mxu2 %v387_v48  ;;  %606 = vmatpush.msra.mxu1 %v1023_v6 }
  0xd5   :  { %607 = vmatpush.msra.mxu1 %v1072_v13 }
  0xd7   :  { %608 = vmatpush.msra.mxu1 %v1075_v14 }
  0xd9   :  { %v406_v46 = vld [vmem:[#allocation2 + $0x26] sm:$0xff]  ;;  %609 = vmatpush.msra.mxu1 %v1078_v15 }
  0xda   :  { %v388_v49 = vld [vmem:[#allocation2 + $0x24] sm:$0xff]  ;;  %442 = vmatmul.f32.gmra.mxu1 %v406_v46  ;;  %v375_v54 = vpop.f32.mrf.mxu0 }
  0xdb   :  { %465 = vmatmul.f32.gmra.mxu2 %v388_v49  ;;  %610 = vmatpush.msra.mxu1 %v1081_v16  ;;  %v376_v0 = vadd.f32 %v627_v60, %v375_v54  ;;  %v628_v16 = vld [vmem:[%s1160_s5] ss:$0 sm:$0xff]  ;;  %s791_s5 = smov [#allocation12]  }
  0xdd   :  { %611 = vmatpush.msra.mxu1 %v1084_v18 }
  0xdf   :  { %612 = vmatpush.msra.mxu1 %v1087_v19  ;;  %v629_v19 = vld [vmem:[%s1161_s6] ss:$0 sm:$0xff]  ;;  %s581_s6 = sshll.u32 %s791_s5, 4  ;;  %s582_s6 = int_to_ptr.vmem [resolvable:$true] %s581_s6 }
  0xe1   :  { %613 = vmatpush.msra.mxu1 %v1090_v20  ;;  %v630_v20 = vld [vmem:[%s1164_s9] ss:$0 sm:$0xff] }
  0xe2   :  { %567 = vmatmul.f32.vlgmr.msra.gmra.mxu1 %v527_v50  ;;  %v378_v5 = vpop.f32.mrf.mxu0 }
  0xe3   :  { %v379_v11 = vadd.f32 %v627_v60, %v378_v5 }
  0xf4   :  { %v565_v22 = vpop.f32.mrf.mxu0 }
  0xf5   :  { %v566_v26 = vadd.f32 %v630_v20, %v565_v22 }
 0x13d   :  { %v314_v52 = vpop.f32.mrf.mxu3 }
 0x13f   :  { %v249_v51 = vpop.f32.mrf.mxu1 }
 0x145   :  { %v317_v62 = vpop.f32.mrf.mxu3 }
 0x146   :  { %v272_v53 = vpop.f32.mrf.mxu2 }
 0x147   :  { %v273_v55 = vadd.f32 %v272_v53, %v249_v51  ;;  %v252_v57 = vpop.f32.mrf.mxu1 }
 0x149   :  { %v320_v58 = vadd.f32 %v314_v52, %v273_v55 }
 0x14b   :  { %v326_v61 = vmul.f32 %v625_v56, %v320_v58 }
 0x14d   :  { %v332_v63 = vadd.f32 %v626_v59, %v326_v61  ;;  %v504_v13 = vpop.f32.mrf.mxu3 }
 0x14e   :  { %v275_v1 = vpop.f32.mrf.mxu2 }
 0x14f   :  { %v276_v2 = vadd.f32 %v275_v1, %v252_v57  ;;  %v334_v3 = vmax.f32 %v332_v63, 0.0  ;;  %v440_v4 = vpop.f32.mrf.mxu1 }
 0x151   :  { %v321_v6 = vadd.f32 %v317_v62, %v276_v2  ;;  %v381_v7 = vadd.f32 %v376_v0, %v334_v3 }
 0x153   :  { %v327_v8 = vmul.f32 %v625_v56, %v321_v6  ;;  %v383_v9 = vmax.f32 %v381_v7, 0.0 }
 0x155   :  { %v333_v10 = vadd.f32 %v626_v59, %v327_v8  ;;  %385 = vst [vmem:[#allocation12] sm:$0xff] %v383_v9  ;;  %v507_v30 = vpop.f32.mrf.mxu3 }
 0x156   :  { %v463_v12 = vpop.f32.mrf.mxu2 }
 0x157   :  { %v335_v14 = vmax.f32 %v333_v10, 0.0  ;;  %v464_v15 = vadd.f32 %v463_v12, %v440_v4  ;;  %v443_v21 = vpop.f32.mrf.mxu1 }
 0x159   :  { %v382_v17 = vadd.f32 %v379_v11, %v335_v14  ;;  %v510_v18 = vadd.f32 %v504_v13, %v464_v15 }
 0x15b   :  { %v384_v23 = vmax.f32 %v382_v17, 0.0  ;;  %v516_v24 = vmul.f32 %v628_v16, %v510_v18 }
 0x15d   :  { %386 = vst [vmem:[#allocation12 + $0x8] sm:$0xff] %v384_v23  ;;  %v522_v25 = vadd.f32 %v629_v19, %v516_v24 }
 0x15e   :  { %v466_v27 = vpop.f32.mrf.mxu2 }
 0x15f   :  { %v467_v28 = vadd.f32 %v466_v27, %v443_v21  ;;  %v524_v29 = vmax.f32 %v522_v25, 0.0  ;;  %v568_v34 = vpop.f32.mrf.mxu1 }
 0x160   :  { %v569_v39 = vadd.f32 %v630_v20, %v568_v34 }
 0x161   :  { %v511_v31 = vadd.f32 %v507_v30, %v467_v28  ;;  %v571_v32 = vadd.f32 %v566_v26, %v524_v29 }
 0x163   :  { %v517_v35 = vmul.f32 %v628_v16, %v511_v31  ;;  %v573_v37 = vmax.f32 %v571_v32, 0.0 }
 0x165   :  { %v523_v38 = vadd.f32 %v629_v19, %v517_v35  ;;  %575 = vst [vmem:[#allocation12 + $0x10] sm:$0xff] %v573_v37 }
 0x167   :  { %v525_v41 = vmax.f32 %v523_v38, 0.0 }
 0x169   :  { %v572_v42 = vadd.f32 %v569_v39, %v525_v41 }
 0x16b   :  { %v574_v43 = vmax.f32 %v572_v42, 0.0 }
 0x16d   :  { %576 = vst [vmem:[#allocation12 + $0x18] sm:$0xff] %v574_v43 }
 0x16e   :  { %589 = dma.vmem_to_hbm [thread:$0]  %s582_s6, 512, %s584_s30, [#allocation5], %s784_s21, %s784_s21, %s785_s22  }
 0x16f   :  { %781 = dma.done.wait [#allocation5], 512  }
 0x170   :  { %782 = vsyncadd [#allocation5], 4294966784 }
 0x171   :  { %594 = vsyncpa [#allocation4], 1 }
 0x172   :  { %595 = vsyncpa [#allocation7], 1 }
 0x173   :  { %596 = vsyncpa [#allocation10], 1 }
 0x174   :  { %597 = vsyncpa [#allocation5], 1 }

</bundles_post_ra>
